<compile_context>
chip_gen: v6e
topology: v6e:2x2x1
jax: 0.10.0
libtpu: 0.0.40
codegen_flags: <defaults>
</compile_context>

<pallas_src>
import functools

import jax
import jax.numpy as jnp
from jax.experimental import pallas as pl
from jax.experimental.pallas import tpu as pltpu


def _softplus(x):
    # Numerically stable softplus = log(1 + exp(x)), matching F.softplus
    # (beta=1): max(x, 0) + log1p(exp(-|x|)).
    return jnp.maximum(x, 0.0) + jnp.log1p(jnp.exp(-jnp.abs(x)))


def _actor_kernel(obs_ref, w1_ref, b1_ref, w2_ref, b2_ref, wh_ref, bh_ref,
                  out_ref, *, action_dims):
    x = obs_ref[...]                                              # (TB, D_in)

    # Hoist bias loads (each (1, N) tile loaded once per grid step).
    b1 = b1_ref[...]
    b2 = b2_ref[...]
    bh = bh_ref[...]

    # fc1 + relu
    h1 = jnp.dot(x, w1_ref[...], preferred_element_type=jnp.float32)
    h1 = jnp.maximum(h1 + b1, 0.0)                                # (TB, H)

    # fc2 + relu
    h2 = jnp.dot(h1, w2_ref[...], preferred_element_type=jnp.float32)
    h2 = jnp.maximum(h2 + b2, 0.0)                                # (TB, H)

    # Fused heads: [mean | log_std] in one matmul -> (TB, 2A)
    z = jnp.dot(h2, wh_ref[...], preferred_element_type=jnp.float32) + bh
    col = jax.lax.broadcasted_iota(jnp.int32, z.shape, 1)
    out = jnp.where(col < action_dims, z, _softplus(z))           # softplus on std half
    out_ref[...] = out.astype(out_ref.dtype)


def _pick_tb(batch):
    """Largest power-of-two batch tile (<=1024, >=8) that divides the batch."""
    for tb in (1024, 512, 256, 128, 64, 32, 16, 8):
        if batch % tb == 0:
            return tb
    return batch  # tiny / ragged batch: single full block


def tanh_gaussian_actor_forward(obs, params, *, block_batch=None):
    """obs: (B, input_dims) f32. params: dict of weights/biases (see init_params)."""
    B, D_in = obs.shape
    A = params["wm"].shape[1]

    # Fuse mean / log_std heads into a single (H, 2A) weight and (1, 2A) bias.
    wh = jnp.concatenate([params["wm"], params["ws"]], axis=1)
    bh = jnp.concatenate([params["bm"], params["bs"]], axis=1)

    tb = block_batch if block_batch is not None else _pick_tb(B)
    grid = (pl.cdiv(B, tb),)

    def resident(shape):
        # Same block for every grid step -> stays VMEM-resident, no re-DMA.
        return pl.BlockSpec(shape, lambda i: (0, 0))

    out = pl.pallas_call(
        functools.partial(_actor_kernel, action_dims=A),
        out_shape=jax.ShapeDtypeStruct((B, 2 * A), jnp.float32),
        grid=grid,
        in_specs=[
            pl.BlockSpec((tb, D_in), lambda i: (i, 0)),   # obs: tiled over batch
            resident(params["w1"].shape),
            resident(params["b1"].shape),
            resident(params["w2"].shape),
            resident(params["b2"].shape),
            resident(wh.shape),
            resident(bh.shape),
        ],
        out_specs=pl.BlockSpec((tb, 2 * A), lambda i: (i, 0)),
        compiler_params=pltpu.CompilerParams(
            dimension_semantics=("parallel",)),
    )(obs, params["w1"], params["b1"], params["w2"], params["b2"], wh, bh)

    mean = out[:, :A]
    std = out[:, A:]
    return mean, std


def init_params(key, input_dims, action_dims, hidden_size):
    """Deterministic xavier_normal (gain=1) weights, zero biases — matches glorot_init."""
    def xavier(key, fan_in, fan_out):
        std = (2.0 / (fan_in + fan_out)) ** 0.5
        return std * jax.random.normal(key, (fan_in, fan_out), dtype=jnp.float32)

    k1, k2, k3, k4 = jax.random.split(key, 4)
    return {
        "w1": xavier(k1, input_dims, hidden_size),
        "b1": jnp.zeros((1, hidden_size), jnp.float32),
        "w2": xavier(k2, hidden_size, hidden_size),
        "b2": jnp.zeros((1, hidden_size), jnp.float32),
        "wm": xavier(k3, hidden_size, action_dims),
        "bm": jnp.zeros((1, action_dims), jnp.float32),
        "ws": xavier(k4, hidden_size, action_dims),
        "bs": jnp.zeros((1, action_dims), jnp.float32),
    }


if __name__ == "__main__":
    input_dims, action_dims, hidden_size = 16, 8, 32
    batch = 64  # small demo batch; block_batch=16 exercises a 4-step grid

    key = jax.random.PRNGKey(0)
    k_obs, k_params = jax.random.split(key)
    obs = jax.random.normal(k_obs, (batch, input_dims), dtype=jnp.float32)
    params = init_params(k_params, input_dims, action_dims, hidden_size)

    mean, std = tanh_gaussian_actor_forward(obs, params, block_batch=16)
    jax.block_until_ready((mean, std))

    # Reference check in plain JAX (same math as the PyTorch module).
    h1 = jnp.maximum(obs @ params["w1"] + params["b1"], 0.0)
    h2 = jnp.maximum(h1 @ params["w2"] + params["b2"], 0.0)
    mean_ref = h2 @ params["wm"] + params["bm"]
    std_ref = jax.nn.softplus(h2 @ params["ws"] + params["bs"])
    assert jnp.allclose(mean, mean_ref, atol=1e-5), "mean mismatch"
    assert jnp.allclose(std, std_ref, atol=1e-5), "std mismatch"

    print("KERNEL_OK")
</pallas_src>

<mosaic_0001>
module attributes {stable_mosaic.version = 11 : i64} {
  func.func @_actor_kernel(%arg0: i32, %arg1: memref<16x16xf32, #tpu.memory_space<vmem>>, %arg2: memref<16x32xf32, #tpu.memory_space<vmem>>, %arg3: memref<1x32xf32, #tpu.memory_space<vmem>>, %arg4: memref<32x32xf32, #tpu.memory_space<vmem>>, %arg5: memref<1x32xf32, #tpu.memory_space<vmem>>, %arg6: memref<32x16xf32, #tpu.memory_space<vmem>>, %arg7: memref<1x16xf32, #tpu.memory_space<vmem>>, %arg8: memref<16x16xf32, #tpu.memory_space<vmem>>) attributes {dimension_semantics = [#tpu.dimension_semantics<parallel>], iteration_bounds = array<i64: 4>, scalar_prefetch = 0 : i64, scratch_operands = 0 : i64, tpu.core_type = #tpu.core_type<tc>, window_params = [{transform_indices = @transform_0, window_bounds = array<i64: 16, 16>}, {pipeline_mode = #tpu.pipeline_mode<synchronous>, transform_indices = @transform_1, window_bounds = array<i64: 16, 32>}, {pipeline_mode = #tpu.pipeline_mode<synchronous>, transform_indices = @transform_2, window_bounds = array<i64: 1, 32>}, {pipeline_mode = #tpu.pipeline_mode<synchronous>, transform_indices = @transform_3, window_bounds = array<i64: 32, 32>}, {pipeline_mode = #tpu.pipeline_mode<synchronous>, transform_indices = @transform_4, window_bounds = array<i64: 1, 32>}, {pipeline_mode = #tpu.pipeline_mode<synchronous>, transform_indices = @transform_5, window_bounds = array<i64: 32, 16>}, {pipeline_mode = #tpu.pipeline_mode<synchronous>, transform_indices = @transform_6, window_bounds = array<i64: 1, 16>}, {transform_indices = @transform_7, window_bounds = array<i64: 16, 16>}]} {
    %c0 = arith.constant 0 : index
    %c0_0 = arith.constant 0 : index
    %0 = vector.load %arg1[%c0, %c0_0] : memref<16x16xf32, #tpu.memory_space<vmem>>, vector<16x16xf32>
    %c0_1 = arith.constant 0 : index
    %c0_2 = arith.constant 0 : index
    %1 = vector.load %arg3[%c0_1, %c0_2] : memref<1x32xf32, #tpu.memory_space<vmem>>, vector<1x32xf32>
    %c0_3 = arith.constant 0 : index
    %c0_4 = arith.constant 0 : index
    %2 = vector.load %arg5[%c0_3, %c0_4] : memref<1x32xf32, #tpu.memory_space<vmem>>, vector<1x32xf32>
    %c0_5 = arith.constant 0 : index
    %c0_6 = arith.constant 0 : index
    %3 = vector.load %arg7[%c0_5, %c0_6] : memref<1x16xf32, #tpu.memory_space<vmem>>, vector<1x16xf32>
    %c0_7 = arith.constant 0 : index
    %c0_8 = arith.constant 0 : index
    %4 = vector.load %arg2[%c0_7, %c0_8] : memref<16x32xf32, #tpu.memory_space<vmem>>, vector<16x32xf32>
    %cst = arith.constant dense<0.000000e+00> : vector<16x32xf32>
    %5 = tpu.matmul %0, %4, %cst {dimension_numbers = #tpu.dot_dimension_numbers<[1], [0], [0], [1], [0, 0, 1, 1], [], []>} : vector<16x16xf32>, vector<16x32xf32>, vector<16x32xf32> -> vector<16x32xf32>
    %6 = vector.broadcast %1 : vector<1x32xf32> to vector<16x32xf32>
    %7 = arith.addf %5, %6 : vector<16x32xf32>
    %cst_9 = arith.constant 0.000000e+00 : f32
    %8 = vector.broadcast %cst_9 : f32 to vector<16x32xf32>
    %9 = arith.maximumf %7, %8 : vector<16x32xf32>
    %c0_10 = arith.constant 0 : index
    %c0_11 = arith.constant 0 : index
    %10 = vector.load %arg4[%c0_10, %c0_11] : memref<32x32xf32, #tpu.memory_space<vmem>>, vector<32x32xf32>
    %cst_12 = arith.constant dense<0.000000e+00> : vector<16x32xf32>
    %11 = tpu.matmul %9, %10, %cst_12 {dimension_numbers = #tpu.dot_dimension_numbers<[1], [0], [0], [1], [0, 0, 1, 1], [], []>} : vector<16x32xf32>, vector<32x32xf32>, vector<16x32xf32> -> vector<16x32xf32>
    %12 = vector.broadcast %2 : vector<1x32xf32> to vector<16x32xf32>
    %13 = arith.addf %11, %12 : vector<16x32xf32>
    %cst_13 = arith.constant 0.000000e+00 : f32
    %14 = vector.broadcast %cst_13 : f32 to vector<16x32xf32>
    %15 = arith.maximumf %13, %14 : vector<16x32xf32>
    %c0_14 = arith.constant 0 : index
    %c0_15 = arith.constant 0 : index
    %16 = vector.load %arg6[%c0_14, %c0_15] : memref<32x16xf32, #tpu.memory_space<vmem>>, vector<32x16xf32>
    %cst_16 = arith.constant dense<0.000000e+00> : vector<16x16xf32>
    %17 = tpu.matmul %15, %16, %cst_16 {dimension_numbers = #tpu.dot_dimension_numbers<[1], [0], [0], [1], [0, 0, 1, 1], [], []>} : vector<16x32xf32>, vector<32x16xf32>, vector<16x16xf32> -> vector<16x16xf32>
    %18 = vector.broadcast %3 : vector<1x16xf32> to vector<16x16xf32>
    %19 = arith.addf %17, %18 : vector<16x16xf32>
    %20 = tpu.iota {dimensions = array<i32: 1>} : vector<16x16xi32>
    %c8_i32 = arith.constant 8 : i32
    %21 = vector.broadcast %c8_i32 : i32 to vector<16x16xi32>
    %22 = arith.cmpi slt, %20, %21 : vector<16x16xi32>
    %cst_17 = arith.constant 0.000000e+00 : f32
    %23 = vector.broadcast %cst_17 : f32 to vector<16x16xf32>
    %24 = arith.maximumf %19, %23 : vector<16x16xf32>
    %25 = math.absf %19 : vector<16x16xf32>
    %cst_18 = arith.constant 0.000000e+00 : f32
    %26 = vector.broadcast %cst_18 : f32 to vector<16x16xf32>
    %27 = arith.subf %26, %25 : vector<16x16xf32>
    %28 = math.exp %27 : vector<16x16xf32>
    %29 = math.log1p %28 : vector<16x16xf32>
    %30 = arith.addf %24, %29 : vector<16x16xf32>
    %31 = arith.select %22, %19, %30 : vector<16x16xi1>, vector<16x16xf32>
    %c0_19 = arith.constant 0 : index
    %c0_20 = arith.constant 0 : index
    %32 = vector.load %arg8[%c0_19, %c0_20] : memref<16x16xf32, #tpu.memory_space<vmem>>, vector<16x16xf32>
    tpu.vector_store %arg8[%c0_19, %c0_20], %31 {strides = array<i32>} : memref<16x16xf32, #tpu.memory_space<vmem>>, vector<16x16xf32>,
    return
  }
  func.func @transform_0(%arg0: i32) -> (i32, i32) {
    %c0_i32 = arith.constant 0 : i32
    %c0_i32_0 = arith.constant 0 : i32
    return %arg0, %c0_i32 : i32, i32
  }
  func.func @transform_1(%arg0: i32) -> (i32, i32) {
    %c0_i32 = arith.constant 0 : i32
    %c0_i32_0 = arith.constant 0 : i32
    %c0_i32_1 = arith.constant 0 : i32
    return %c0_i32, %c0_i32_0 : i32, i32
  }
  func.func @transform_2(%arg0: i32) -> (i32, i32) {
    %c0_i32 = arith.constant 0 : i32
    %c0_i32_0 = arith.constant 0 : i32
    %c0_i32_1 = arith.constant 0 : i32
    return %c0_i32, %c0_i32_0 : i32, i32
  }
  func.func @transform_3(%arg0: i32) -> (i32, i32) {
    %c0_i32 = arith.constant 0 : i32
    %c0_i32_0 = arith.constant 0 : i32
    %c0_i32_1 = arith.constant 0 : i32
    return %c0_i32, %c0_i32_0 : i32, i32
  }
  func.func @transform_4(%arg0: i32) -> (i32, i32) {
    %c0_i32 = arith.constant 0 : i32
    %c0_i32_0 = arith.constant 0 : i32
    %c0_i32_1 = arith.constant 0 : i32
    return %c0_i32, %c0_i32_0 : i32, i32
  }
  func.func @transform_5(%arg0: i32) -> (i32, i32) {
    %c0_i32 = arith.constant 0 : i32
    %c0_i32_0 = arith.constant 0 : i32
    %c0_i32_1 = arith.constant 0 : i32
    return %c0_i32, %c0_i32_0 : i32, i32
  }
  func.func @transform_6(%arg0: i32) -> (i32, i32) {
    %c0_i32 = arith.constant 0 : i32
    %c0_i32_0 = arith.constant 0 : i32
    %c0_i32_1 = arith.constant 0 : i32
    return %c0_i32, %c0_i32_0 : i32, i32
  }
  func.func @transform_7(%arg0: i32) -> (i32, i32) {
    %c0_i32 = arith.constant 0 : i32
    %c0_i32_0 = arith.constant 0 : i32
    return %arg0, %c0_i32 : i32, i32
  }
}

</mosaic_0001>

<bundles_post_ra>
// kernel: tpu_custom_call.1
= control target key start
LH: loop header
LB: loop body
LE: loop exit
PB: predicated region body
PF: predicated region fallthrough
CT: control target
= control target key end

     0   :  { %s786_s24 = smov 0   ;;  %s857_s0 = inlined_call_operand.vmem [shape: f32[64,16], index: 0, kind: input, shape index: {}]   ;;  %s858_s1 = inlined_call_operand.vmem [shape: f32[16,32], index: 1, kind: input, shape index: {}]   ;;  %s859_s2 = inlined_call_operand.vmem [shape: f32[1,32], index: 2, kind: input, shape index: {}]   ;;  %s860_s3 = inlined_call_operand.vmem [shape: f32[32,32], index: 3, kind: input, shape index: {}]   ;;  %s861_s4 = inlined_call_operand.vmem [shape: f32[1,32], index: 4, kind: input, shape index: {}]   ;;  %s862_s5 = inlined_call_operand.vmem [shape: f32[32,16], index: 5, kind: input, shape index: {}]   ;;  %s863_s6 = inlined_call_operand.vmem [shape: f32[1,16], index: 6, kind: input, shape index: {}]   ;;  %s864_s7 = inlined_call_operand.vmem [shape: f32[64,16], index: 7, kind: output, shape index: {}]  }
   0x1 LB: > { %s657_s25 = sadd.s32 4294967295, %s744_s24   ;;  %p661_p0 = scmp.ge.s32.totalorder %s744_s24, 1  ;;  %s744_s24 = sphi %s786_s24, %s17_s24  }
   0x2   : > { %p238_p1 = scmp.lt.s32.totalorder %s744_s24, 5 }
   0x4   : > { %p239_p2 = pnand %p661_p0, %p238_p1 }
   0x5   : > { %s662_s30 = sshll.u32 (!%p239_p2), %s657_s25, 1 }
   0x6   : > { %242 = sbr.rel (%p239_p2) target bundleno = 656 (0x290), region = 48  ;;  %p271_p3 = scmp.lt.s32.totalorder (!%p239_p2), %s662_s30, 7 }
   0xb   : > { %v288_v0 = vld [vmem:[%s858_s1 + $0x8] sm:$0xff]  ;;  %v287_v1 = vld [vmem:[%s858_s1] sm:$0xff]  ;;  %s866_s30 = smov (!%p271_p3, %s662_s30), 7  ;;  %vm295_vm0 = vcmask 130048   ;;  %v382_v4 = vld [vmem:[%s860_s3 + $0x18] sm:$0xff]  ;;  %vm389_vm1 = vcmask 261120   ;;  %v564_v44 = vlaneseq }
   0xc   : > { %693 = vmatprep.subr.mxu0 %v288_v0  ;;  %s663_s8 = sshll.u32 %s866_s30, 3  ;;  %700 = vmatprep.subr.mxu1 %v382_v4  ;;  %v381_v5 = vld [vmem:[%s860_s3 + $0x10] sm:$0xff]  ;;  %v380_v6 = vld [vmem:[%s860_s3 + $0x8] sm:$0xff]  ;;  %v379_v7 = vld [vmem:[%s860_s3] sm:$0xff] }
   0xd   : > { %694 = vmatpush3.msra.mxu0 %v288_v0  ;;  %s274_s11 = scalar_lea.vmem %s857_s0, %s663_s8  ;;  %701 = vmatpush3.msra.mxu1 %v382_v4  ;;  %v666_v8 = vld [vmem:[%s859_s2] ss:$0 sm:$0xff]  ;;  %v476_v15 = vld [vmem:[%s862_s5 + $0x18] sm:$0xff]  ;;  %v475_v16 = vld [vmem:[%s862_s5 + $0x10] sm:$0xff]  ;;  %v565_v52 = vand.u32 127, %v564_v44  ;;  %s280_s16 = scalar_lea.vmem %s864_s7, %s663_s8 }
   0xe   : > { %695 = vmatprep.subr.mxu0 %v287_v1  ;;  %v282_v2 = vld [vmem:[%s274_s11] sm:$0xff]  ;;  %v283_v3 = vld [vmem:[%s274_s11 + $0x8] sm:$0xff]  ;;  %702 = vmatprep.subr.mxu1 %v381_v5 }
   0xf   : > { %696 = vmatpush3.msra.mxu0 %v287_v1  ;;  %697 = vmatprep.mubr.msk.f32.mxu0 %vm295_vm0, %v282_v2  ;;  %v474_v17 = vld [vmem:[%s862_s5 + $0x8] sm:$0xff]  ;;  %v473_v18 = vld [vmem:[%s862_s5] sm:$0xff]  ;;  %vm566_vm4 = vcmp.lt.s32.totalorder %v565_v52, 8 }
  0x10   : > { %698 = vmatmul.mubr.msk.f32.vlgmr.msra.gmra.mxu0 %vm295_vm0, %v283_v3  ;;  %703 = vmatpush3.msra.mxu1 %v381_v5  ;;  %v669_v19 = vld [vmem:[%s861_s4] ss:$0 sm:$0xff] }
  0x11   : > { %704 = vmatprep.subr.mxu1 %v380_v6  ;;  %711 = vmatprep.subr.mxu0 %v476_v15  ;;  %v672_v26 = vld [vmem:[%s863_s6] ss:$0 sm:$0xff] }
  0x12   : > { %705 = vmatpush3.msra.mxu1 %v380_v6  ;;  %712 = vmatpush3.msra.mxu0 %v476_v15 }
  0x13   : > { %706 = vmatprep.subr.mxu1 %v379_v7  ;;  %713 = vmatprep.subr.mxu0 %v475_v16 }
  0x14   : > { %707 = vmatpush3.msra.mxu1 %v379_v7  ;;  %714 = vmatpush3.msra.mxu0 %v475_v16 }
  0x15   : > { %715 = vmatprep.subr.mxu0 %v474_v17 }
  0x16   : > { %716 = vmatpush3.msra.mxu0 %v474_v17 }
  0x17   : > { %717 = vmatprep.subr.mxu0 %v473_v18 }
  0x18   : > { %718 = vmatpush3.msra.mxu0 %v473_v18 }
  0xd0   : > { %v699_v9 = vpop.f32.mrf.mxu0 }
  0xd1   : > { %v374_v10 = vadd.f32 %v699_v9, %v666_v8 }
  0xd2   : > { %v368_v11 = vpop.f32.mrf.mxu0 }
  0xd3   : > { %v369_v12 = vadd.f32 %v666_v8, %v368_v11  ;;  %v378_v14 = vmax.f32 %v374_v10, 0.0 }
  0xd5   : > { %v377_v13 = vmax.f32 %v369_v12, 0.0 }
  0xd7   : > { %708 = vmatprep.mubr.msk.f32.mxu1 %vm389_vm1, %v377_v13 }
  0xd8   : > { %709 = vmatmul.mubr.msk.f32.vlgmr.msra.gmra.mxu1 %vm389_vm1, %v378_v14 }
 0x198   : > { %v710_v20 = vpop.f32.mrf.mxu1 }
 0x199   : > { %v468_v21 = vadd.f32 %v710_v20, %v669_v19 }
 0x19a   : > { %v462_v22 = vpop.f32.mrf.mxu1 }
 0x19b   : > { %v463_v23 = vadd.f32 %v669_v19, %v462_v22  ;;  %v472_v25 = vmax.f32 %v468_v21, 0.0 }
 0x19d   : > { %v471_v24 = vmax.f32 %v463_v23, 0.0 }
 0x19f   : > { %719 = vmatprep.mubr.msk.f32.mxu0 %vm389_vm1, %v471_v24 }
 0x1a0   : > { %720 = vmatmul.mubr.msk.f32.vlgmr.msra.gmra.mxu0 %vm389_vm1, %v472_v25 }
 0x260   : > { %v721_v27 = vpop.f32.mrf.mxu0 }
 0x261   : > { %v561_v28 = vadd.f32 %v721_v27, %v672_v26 }
 0x262   : > { %v555_v29 = vpop.f32.mrf.mxu0 }
 0x263   : > { %v570_v30 = vand.u32 2147483647, %v561_v28  ;;  %v556_v31 = vadd.f32 %v672_v26, %v555_v29  ;;  %v568_v53 = vmax.f32 %v561_v28, 0.0 }
 0x265   : > { %v572_v32 = vsub.f32 0.0, %v570_v30  ;;  %v569_v33 = vand.u32 2147483647, %v556_v31  ;;  %v567_v57 = vmax.f32 %v556_v31, 0.0 }
 0x267   : > { %v575_v34 = vmul.f32 1.442695, %v572_v32  ;;  %v571_v35 = vsub.f32 0.0, %v569_v33 }
 0x269   : > { %730 = vpow2.f32 %v575_v34  ;;  %v573_v36 = vmul.f32 1.442695, %v571_v35 }
 0x26b   : > { %732 = vpow2.f32 %v573_v36 }
 0x276   : > { %v731_v37 = vpop.eup %730 }
 0x277   : > { %v586_v38 = vadd.f32 1.0, %v731_v37  ;;  %v589_v41 = vmul.f32 -0.5, %v731_v37  ;;  %v592_v45 = vand.u32 2147483647, %v731_v37 }
 0x278   : > { %v733_v39 = vpop.eup %732 }
 0x279   : > { %734 = vlog2.f32 %v586_v38  ;;  %v577_v40 = vadd.f32 1.0, %v733_v39  ;;  %v580_v42 = vmul.f32 -0.5, %v733_v39  ;;  %v590_v43 = vadd.f32 1.0, %v589_v41 }
 0x27a   : > { %v583_v48 = vand.u32 2147483647, %v733_v39  ;;  %vm593_vm2 = vcmp.lt.f32.partialorder %v592_v45, 0.0004427343 }
 0x27b   : > { %736 = vlog2.f32 %v577_v40  ;;  %v581_v46 = vadd.f32 1.0, %v580_v42  ;;  %v591_v50 = vmul.f32 %v731_v37, %v590_v43 }
 0x27c   : > { %vm584_vm3 = vcmp.lt.f32.partialorder %v583_v48, 0.0004427343 }
 0x27d   : > { %v582_v56 = vmul.f32 %v733_v39, %v581_v46 }
 0x286   : > { %v735_v47 = vpop.eup %734 }
 0x287   : > { %v588_v49 = vmul.f32 0.6931472, %v735_v47 }
 0x288   : > { %v737_v51 = vpop.eup %736 }
 0x289   : > { %v594_v54 = vsel %vm593_vm2, %v591_v50, %v588_v49  ;;  %v579_v55 = vmul.f32 0.6931472, %v737_v51 }
 0x28a   : > { %v596_v58 = vadd.f32 %v594_v54, %v568_v53 }
 0x28b   : > { %v585_v59 = vsel %vm584_vm3, %v582_v56, %v579_v55 }
 0x28c   : > { %v595_v60 = vadd.f32 %v585_v59, %v567_v57  ;;  %v598_v62 = vsel %vm566_vm4, %v561_v28, %v596_v58 }
 0x28d   : > { %600 = vst.msk [vmem:[%s280_s16 + $0x8] sm:$0xff] %vm295_vm0, %v598_v62 }
 0x28e   : > { %v597_v61 = vsel %vm566_vm4, %v556_v31, %v595_v60 }
 0x28f   : > { %599 = vst.msk [vmem:[%s280_s16] sm:$0xff] %vm295_vm0, %v597_v61 }
 0x290 PF: > { %s17_s24 = sadd.s32 1, %s744_s24  }
 0x291   : > { %p14_p4 = scmp.ge.s32.totalorder %s17_s24, 6  }
 0x293   :  { %16 = sbr.rel (!%p14_p4) target bundleno = 1 (0x1), region = 78 }

</bundles_post_ra>
